<compile_context>
chip_gen: v6e
topology: v6e:2x2x1
jax: 0.10.0
libtpu: 0.0.40
codegen_flags: <defaults>
</compile_context>

<pallas_src>
import functools

import jax
import jax.numpy as jnp
from jax.experimental import pallas as pl
from jax.experimental.pallas import tpu as pltpu


def _round_up(x, m):
    return (x + m - 1) // m * m


def gru_kernel(x_ref, h_ref, wi_ref, bi_ref, wh_ref, bh_ref, h_out_ref):
    """Fused single-step GRU.

    x_ref : (TB, Ip)   f32   input tile
    h_ref : (TB, Hp)   f32   hidden tile
    wi_ref: (Ip, 3*Hp) bf16  [W_ir | W_iz | W_in] (pre-transposed, in x out)
    bi_ref: (1, 3*Hp)  f32
    wh_ref: (Hp, 3*Hp) bf16  [W_hr | W_hz | W_hn]
    bh_ref: (1, 3*Hp)  f32
    """
    Hp = h_out_ref.shape[-1]

    x = x_ref[...]
    h = h_ref[...]

    # Two fused MXU matmuls: bf16 operands, f32 accumulation.
    gi = jnp.dot(x.astype(wi_ref.dtype), wi_ref[...],
                 preferred_element_type=jnp.float32) + bi_ref[...]
    gh = jnp.dot(h.astype(wh_ref.dtype), wh_ref[...],
                 preferred_element_type=jnp.float32) + bh_ref[...]

    # Lane-aligned slices (Hp is a multiple of 128).
    r = jax.nn.sigmoid(gi[:, 0 * Hp:1 * Hp] + gh[:, 0 * Hp:1 * Hp])
    z = jax.nn.sigmoid(gi[:, 1 * Hp:2 * Hp] + gh[:, 1 * Hp:2 * Hp])
    n = jnp.tanh(gi[:, 2 * Hp:3 * Hp] + r * gh[:, 2 * Hp:3 * Hp])

    # h_t = (1 - z) * n + z * h  ==  n + z * (h - n)  (one fewer VPU mul)
    h_out_ref[...] = n + z * (h - n)


def pack_gru_params(params, *, input_size, hidden_size,
                    pad_input, pad_hidden, weight_dtype=jnp.bfloat16):
    """Pad each gate block to (pad_in, pad_hidden) and concat to fused weights."""
    (w_ir, b_ir, w_hr, b_hr, w_iz, b_iz, w_hz, b_hz,
     w_in, b_in, w_hn, b_hn) = params

    def pad_w(w, rows, cols):
        return jnp.pad(w, ((0, rows - w.shape[0]), (0, cols - w.shape[1])))

    def pad_b(b, cols):
        return jnp.pad(b, ((0, 0), (0, cols - b.shape[1])))

    w_i = jnp.concatenate([pad_w(w_ir, pad_input, pad_hidden),
                           pad_w(w_iz, pad_input, pad_hidden),
                           pad_w(w_in, pad_input, pad_hidden)],
                          axis=1).astype(weight_dtype)
    w_h = jnp.concatenate([pad_w(w_hr, pad_hidden, pad_hidden),
                           pad_w(w_hz, pad_hidden, pad_hidden),
                           pad_w(w_hn, pad_hidden, pad_hidden)],
                          axis=1).astype(weight_dtype)
    b_i = jnp.concatenate([pad_b(b_ir, pad_hidden),
                           pad_b(b_iz, pad_hidden),
                           pad_b(b_in, pad_hidden)], axis=1).astype(jnp.float32)
    b_h = jnp.concatenate([pad_b(b_hr, pad_hidden),
                           pad_b(b_hz, pad_hidden),
                           pad_b(b_hn, pad_hidden)], axis=1).astype(jnp.float32)
    return w_i, b_i, w_h, b_h


@functools.partial(jax.jit, static_argnames=("tile_b",))
def gru_cell(x, h, packed, *, tile_b=8):
    """One GRU step. x: (B, I), h: (B, H).  Returns (h_t, h_t)."""
    B, I = x.shape
    _, H = h.shape
    w_i, b_i, w_h, b_h = packed
    Ip = w_i.shape[0]
    Hp = w_h.shape[0]
    Bp = _round_up(B, tile_b)

    # Lane/sublane-friendly padding (zeros are exact for the GRU math).
    x_p = jnp.pad(x.astype(jnp.float32), ((0, Bp - B), (0, Ip - I)))
    h_p = jnp.pad(h.astype(jnp.float32), ((0, Bp - B), (0, Hp - H)))

    grid = (Bp // tile_b,)
    h_out = pl.pallas_call(
        gru_kernel,
        out_shape=jax.ShapeDtypeStruct((Bp, Hp), jnp.float32),
        grid_spec=pltpu.PrefetchScalarGridSpec(
            num_scalar_prefetch=0,
            grid=grid,
            in_specs=[
                pl.BlockSpec((tile_b, Ip), lambda b: (b, 0)),       # x tile
                pl.BlockSpec((tile_b, Hp), lambda b: (b, 0)),       # h tile
                pl.BlockSpec((Ip, 3 * Hp), lambda b: (0, 0)),       # W_i (resident)
                pl.BlockSpec((1, 3 * Hp), lambda b: (0, 0)),        # b_i
                pl.BlockSpec((Hp, 3 * Hp), lambda b: (0, 0)),       # W_h (resident)
                pl.BlockSpec((1, 3 * Hp), lambda b: (0, 0)),        # b_h
            ],
            out_specs=pl.BlockSpec((tile_b, Hp), lambda b: (b, 0)),
        ),
        input_output_aliases={1: 0},   # reuse the padded-h buffer for h_out
        compiler_params=pltpu.CompilerParams(
            dimension_semantics=("parallel",)),
    )(x_p, h_p, w_i, b_i, w_h, b_h)

    h_t = h_out[:B, :H]
    return h_t, h_t


def init_linear(key, in_features, out_features):
    """Deterministic nn.Linear-style init; weight returned pre-transposed (in, out)."""
    k_w, k_b = jax.random.split(key)
    bound = 1.0 / (in_features ** 0.5)
    w = jax.random.uniform(k_w, (in_features, out_features), jnp.float32, -bound, bound)
    b = jax.random.uniform(k_b, (1, out_features), jnp.float32, -bound, bound)
    return w, b


def reference_gru(x, h, params):
    (w_ir, b_ir, w_hr, b_hr, w_iz, b_iz, w_hz, b_hz,
     w_in, b_in, w_hn, b_hn) = params
    r = jax.nn.sigmoid(x @ w_ir + b_ir + h @ w_hr + b_hr)
    z = jax.nn.sigmoid(x @ w_iz + b_iz + h @ w_hz + b_hz)
    n = jnp.tanh(x @ w_in + b_in + r * (h @ w_hn + b_hn))
    return (1.0 - z) * n + z * h


if __name__ == "__main__":
    input_size = 32
    hidden_size = 32   # must equal input_size (see note above)
    batch = 4

    key = jax.random.PRNGKey(0)
    keys = jax.random.split(key, 8)

    x = jax.random.normal(keys[0], (batch, input_size), jnp.float32)
    h = jax.random.normal(keys[1], (batch, hidden_size), jnp.float32)

    w_ir, b_ir = init_linear(keys[2], input_size, input_size)
    w_hr, b_hr = init_linear(keys[3], hidden_size, hidden_size)
    w_iz, b_iz = init_linear(keys[4], input_size, hidden_size)
    w_hz, b_hz = init_linear(keys[5], hidden_size, hidden_size)
    w_in, b_in = init_linear(keys[6], input_size, hidden_size)
    w_hn, b_hn = init_linear(keys[7], hidden_size, hidden_size)

    params = (w_ir, b_ir, w_hr, b_hr, w_iz, b_iz, w_hz, b_hz,
              w_in, b_in, w_hn, b_hn)

    # Pad features to lane width (128) and sublane-pad batch to 8 inside the
    # wrapper; weights are packed/fused once (amortized across steps).
    pad_hidden = _round_up(hidden_size, 128)
    pad_input = _round_up(input_size, 128)
    packed = pack_gru_params(params, input_size=input_size,
                             hidden_size=hidden_size,
                             pad_input=pad_input, pad_hidden=pad_hidden)

    h_t, h_t2 = gru_cell(x, h, packed)
    jax.block_until_ready(h_t)

    ref = reference_gru(x, h, params)   # pure f32 reference
    # bf16 weights => small quantization error vs the f32 reference.
    assert h_t.shape == (batch, hidden_size)
    assert jnp.allclose(h_t, ref, atol=3e-2, rtol=3e-2), "mismatch vs pure-JAX reference"

    print("KERNEL_OK")
</pallas_src>

<mosaic_0001>
module attributes {stable_mosaic.version = 11 : i64} {
  func.func @gru_kernel(%arg0: i32, %arg1: memref<8x128xf32, #tpu.memory_space<vmem>>, %arg2: memref<8x128xf32, #tpu.memory_space<vmem>>, %arg3: memref<128x384xbf16, #tpu.memory_space<vmem>>, %arg4: memref<1x384xf32, #tpu.memory_space<vmem>>, %arg5: memref<128x384xbf16, #tpu.memory_space<vmem>>, %arg6: memref<1x384xf32, #tpu.memory_space<vmem>>, %arg7: memref<8x128xf32, #tpu.memory_space<vmem>>) attributes {dimension_semantics = [#tpu.dimension_semantics<parallel>], iteration_bounds = array<i64: 1>, scalar_prefetch = 0 : i64, scratch_operands = 0 : i64, tpu.core_type = #tpu.core_type<tc>, window_params = [{transform_indices = @transform_0, window_bounds = array<i64: 8, 128>}, {transform_indices = @transform_1, window_bounds = array<i64: 8, 128>}, {pipeline_mode = #tpu.pipeline_mode<synchronous>, transform_indices = @transform_2, window_bounds = array<i64: 128, 384>}, {pipeline_mode = #tpu.pipeline_mode<synchronous>, transform_indices = @transform_3, window_bounds = array<i64: 1, 384>}, {pipeline_mode = #tpu.pipeline_mode<synchronous>, transform_indices = @transform_4, window_bounds = array<i64: 128, 384>}, {pipeline_mode = #tpu.pipeline_mode<synchronous>, transform_indices = @transform_5, window_bounds = array<i64: 1, 384>}, {transform_indices = @transform_6, window_bounds = array<i64: 8, 128>}]} {
    %c0 = arith.constant 0 : index
    %c0_0 = arith.constant 0 : index
    %0 = vector.load %arg1[%c0, %c0_0] : memref<8x128xf32, #tpu.memory_space<vmem>>, vector<8x128xf32>
    %c0_1 = arith.constant 0 : index
    %c0_2 = arith.constant 0 : index
    %1 = vector.load %arg2[%c0_1, %c0_2] : memref<8x128xf32, #tpu.memory_space<vmem>>, vector<8x128xf32>
    %2 = arith.truncf %0 : vector<8x128xf32> to vector<8x128xbf16>
    %c0_3 = arith.constant 0 : index
    %c0_4 = arith.constant 0 : index
    %3 = vector.load %arg3[%c0_3, %c0_4] : memref<128x384xbf16, #tpu.memory_space<vmem>>, vector<128x384xbf16>
    %cst = arith.constant dense<0.000000e+00> : vector<8x384xf32>
    %4 = tpu.matmul %2, %3, %cst {dimension_numbers = #tpu.dot_dimension_numbers<[1], [0], [0], [1], [0, 0, 1, 1], [], []>} : vector<8x128xbf16>, vector<128x384xbf16>, vector<8x384xf32> -> vector<8x384xf32>
    %c0_5 = arith.constant 0 : index
    %c0_6 = arith.constant 0 : index
    %5 = vector.load %arg4[%c0_5, %c0_6] : memref<1x384xf32, #tpu.memory_space<vmem>>, vector<1x384xf32>
    %6 = vector.broadcast %5 : vector<1x384xf32> to vector<8x384xf32>
    %7 = arith.addf %4, %6 : vector<8x384xf32>
    %8 = arith.truncf %1 : vector<8x128xf32> to vector<8x128xbf16>
    %c0_7 = arith.constant 0 : index
    %c0_8 = arith.constant 0 : index
    %9 = vector.load %arg5[%c0_7, %c0_8] : memref<128x384xbf16, #tpu.memory_space<vmem>>, vector<128x384xbf16>
    %cst_9 = arith.constant dense<0.000000e+00> : vector<8x384xf32>
    %10 = tpu.matmul %8, %9, %cst_9 {dimension_numbers = #tpu.dot_dimension_numbers<[1], [0], [0], [1], [0, 0, 1, 1], [], []>} : vector<8x128xbf16>, vector<128x384xbf16>, vector<8x384xf32> -> vector<8x384xf32>
    %c0_10 = arith.constant 0 : index
    %c0_11 = arith.constant 0 : index
    %11 = vector.load %arg6[%c0_10, %c0_11] : memref<1x384xf32, #tpu.memory_space<vmem>>, vector<1x384xf32>
    %12 = vector.broadcast %11 : vector<1x384xf32> to vector<8x384xf32>
    %13 = arith.addf %10, %12 : vector<8x384xf32>
    %14 = vector.extract_strided_slice %7 {offsets = [0, 0], sizes = [8, 128], strides = [1, 1]} : vector<8x384xf32> to vector<8x128xf32>
    %15 = vector.extract_strided_slice %13 {offsets = [0, 0], sizes = [8, 128], strides = [1, 1]} : vector<8x384xf32> to vector<8x128xf32>
    %16 = arith.addf %14, %15 : vector<8x128xf32>
    %17 = arith.negf %16 : vector<8x128xf32>
    %18 = math.exp %17 : vector<8x128xf32>
    %cst_12 = arith.constant 1.000000e+00 : f32
    %19 = vector.broadcast %cst_12 : f32 to vector<8x128xf32>
    %20 = arith.addf %19, %18 : vector<8x128xf32>
    %21 = arith.divf %19, %20 : vector<8x128xf32>
    %22 = vector.extract_strided_slice %7 {offsets = [0, 128], sizes = [8, 128], strides = [1, 1]} : vector<8x384xf32> to vector<8x128xf32>
    %23 = vector.extract_strided_slice %13 {offsets = [0, 128], sizes = [8, 128], strides = [1, 1]} : vector<8x384xf32> to vector<8x128xf32>
    %24 = arith.addf %22, %23 : vector<8x128xf32>
    %25 = arith.negf %24 : vector<8x128xf32>
    %26 = math.exp %25 : vector<8x128xf32>
    %cst_13 = arith.constant 1.000000e+00 : f32
    %27 = vector.broadcast %cst_13 : f32 to vector<8x128xf32>
    %28 = arith.addf %27, %26 : vector<8x128xf32>
    %29 = arith.divf %27, %28 : vector<8x128xf32>
    %30 = vector.extract_strided_slice %7 {offsets = [0, 256], sizes = [8, 128], strides = [1, 1]} : vector<8x384xf32> to vector<8x128xf32>
    %31 = vector.extract_strided_slice %13 {offsets = [0, 256], sizes = [8, 128], strides = [1, 1]} : vector<8x384xf32> to vector<8x128xf32>
    %32 = arith.mulf %21, %31 : vector<8x128xf32>
    %33 = arith.addf %30, %32 : vector<8x128xf32>
    %34 = math.tanh %33 : vector<8x128xf32>
    %35 = arith.subf %1, %34 : vector<8x128xf32>
    %36 = arith.mulf %29, %35 : vector<8x128xf32>
    %37 = arith.addf %34, %36 : vector<8x128xf32>
    %c0_14 = arith.constant 0 : index
    %c0_15 = arith.constant 0 : index
    %38 = vector.load %arg7[%c0_14, %c0_15] : memref<8x128xf32, #tpu.memory_space<vmem>>, vector<8x128xf32>
    tpu.vector_store %arg7[%c0_14, %c0_15], %37 {strides = array<i32>} : memref<8x128xf32, #tpu.memory_space<vmem>>, vector<8x128xf32>,
    return
  }
  func.func @transform_0(%arg0: i32) -> (i32, i32) {
    %c0_i32 = arith.constant 0 : i32
    %c0_i32_0 = arith.constant 0 : i32
    return %arg0, %c0_i32 : i32, i32
  }
  func.func @transform_1(%arg0: i32) -> (i32, i32) {
    %c0_i32 = arith.constant 0 : i32
    %c0_i32_0 = arith.constant 0 : i32
    return %arg0, %c0_i32 : i32, i32
  }
  func.func @transform_2(%arg0: i32) -> (i32, i32) {
    %c0_i32 = arith.constant 0 : i32
    %c0_i32_0 = arith.constant 0 : i32
    %c0_i32_1 = arith.constant 0 : i32
    return %c0_i32, %c0_i32_0 : i32, i32
  }
  func.func @transform_3(%arg0: i32) -> (i32, i32) {
    %c0_i32 = arith.constant 0 : i32
    %c0_i32_0 = arith.constant 0 : i32
    %c0_i32_1 = arith.constant 0 : i32
    return %c0_i32, %c0_i32_0 : i32, i32
  }
  func.func @transform_4(%arg0: i32) -> (i32, i32) {
    %c0_i32 = arith.constant 0 : i32
    %c0_i32_0 = arith.constant 0 : i32
    %c0_i32_1 = arith.constant 0 : i32
    return %c0_i32, %c0_i32_0 : i32, i32
  }
  func.func @transform_5(%arg0: i32) -> (i32, i32) {
    %c0_i32 = arith.constant 0 : i32
    %c0_i32_0 = arith.constant 0 : i32
    %c0_i32_1 = arith.constant 0 : i32
    return %c0_i32, %c0_i32_0 : i32, i32
  }
  func.func @transform_6(%arg0: i32) -> (i32, i32) {
    %c0_i32 = arith.constant 0 : i32
    %c0_i32_0 = arith.constant 0 : i32
    return %arg0, %c0_i32 : i32, i32
  }
}

</mosaic_0001>

<bundles_post_ra>
// kernel: gru_cell.1
= control target key start
LH: loop header
LB: loop body
LE: loop exit
PB: predicated region body
PF: predicated region fallthrough
CT: control target
= control target key end

     0   :  { %11 = vsyncpa [#allocation3], 0  ;;  %s922_s0 = inlined_call_operand.vmem [shape: f32[8,128], index: 0, kind: input, shape index: {}]   ;;  %s923_s1 = inlined_call_operand.vmem [shape: f32[8,128], index: 1, kind: input, shape index: {}, may-alias: {1,6}]   ;;  %s924_s2 = inlined_call_operand.hbm [shape: bf16[128,384], index: 2, kind: input, shape index: {}]   ;;  %s925_s3 = inlined_call_operand.vmem [shape: f32[1,384], index: 3, kind: input, shape index: {}]   ;;  %s926_s4 = inlined_call_operand.hbm [shape: bf16[128,384], index: 4, kind: input, shape index: {}]   ;;  %s927_s5 = inlined_call_operand.vmem [shape: f32[1,384], index: 5, kind: input, shape index: {}]   ;;  %s928_s6 = inlined_call_operand.vmem [shape: f32[8,128], index: 6, kind: output, shape index: {}, may-alias: {1,6}]  }
   0x1   :  { %12 = vsyncpa [#allocation5], 0  ;;  %s832_s21 = smov [#allocation2]  }
   0x2   :  { %s22_s22 = sshll.u32 %s832_s21, 4  ;;  %s23_s22 = int_to_ptr.vmem [resolvable:$true] %s22_s22 }
   0x3   :  { %s796_s23 = scalar_lea.vmem %s23_s22, 3072  ;;  %p801_p1 = scmp.lt.s32.totalorder %s23_s22, %s23_s22 }
   0x4   :  { %p797_p0 = scmp.ne.s32.totalorder %s23_s22, %s796_s23  ;;  %p802_p2 = scmp.lt.s32.totalorder %s796_s23, %s796_s23 }
   0x6   :  { %p803_p3 = por %p802_p2, %p801_p1 }
   0x8   :  { %p804_p4 = pnand %p803_p3, %p797_p0 }
   0xa   :  { %807 = shalt.err (!%p804_p4)
}
   0xb   :  { %s833_s24 = smov 192   ;;  %s834_s25 = smov 12  }
   0xc   :  { %28 = dma.hbm_to_vmem [thread:$0]  %s924_s2, 3072, %s23_s22, [#allocation3], %s833_s24, %s833_s24, %s834_s25  }
   0xd   :  { %s835_s28 = smov [#allocation4]  }
   0xe   :  { %s36_s29 = sshll.u32 %s835_s28, 4  ;;  %s37_s29 = int_to_ptr.vmem [resolvable:$true] %s36_s29 }
   0xf   :  { %s816_s30 = scalar_lea.vmem %s37_s29, 3072  ;;  %p821_p6 = scmp.lt.s32.totalorder %s37_s29, %s37_s29 }
  0x10   :  { %p817_p5 = scmp.ne.s32.totalorder %s37_s29, %s816_s30  ;;  %p822_p7 = scmp.lt.s32.totalorder %s816_s30, %s816_s30 }
  0x12   :  { %p823_p8 = por %p822_p7, %p821_p6 }
  0x14   :  { %p824_p9 = pnand %p823_p8, %p817_p5 }
  0x16   :  { %827 = shalt.err (!%p824_p9)
}
  0x17   :  { %42 = dma.hbm_to_vmem [thread:$0]  %s926_s4, 3072, %s37_s29, [#allocation5], %s833_s24, %s833_s24, %s834_s25  }
  0x18   :  { %828 = dma.done.wait [#allocation3], 3072  }
  0x19   :  { %829 = vsyncadd [#allocation3], 4294964224 }
  0x1a   :  { %830 = dma.done.wait [#allocation5], 3072  }
  0x1b   :  { %831 = vsyncadd [#allocation5], 4294964224  ;;  %v836_v0 = vmov 0.0   ;;  %v837_v1 = vmov 0   ;;  %vm838_vm0 = vmmov 0   ;;  %v52_v23 = vld [vmem:[%s922_s0] sm:$0xff]  ;;  %v89_v62 = vlaneseq }
  0x1c   :  { %667 = vmatprep.subr.bf16.mxu1 %v836_v0  ;;  %264 = vmatprep.mubr.bf16.mxu0 %v837_v1  ;;  %v714_v2 = vld [vmem:[#allocation2 + $0xac] ss:$12 sps:$4 sm:$0xff]   ;;  %v716_v3 = vld [vmem:[#allocation2 + $0xa8] ss:$12 sps:$4 sm:$0xff]   ;;  %v719_v5 = vld [vmem:[#allocation2 + $0x90] ss:$12 sps:$4 sm:$0xff]   ;;  %v54_v26 = vpack.c.bf16 %v52_v23, %v52_v23 }
  0x1d   :  { %683 = vmatprep.mubr.msk.bf16.mxu1 %vm838_vm0, %v836_v0  ;;  %232 = vmatprep.subr.bf16.mxu0 %v714_v2  ;;  %v717_v4 = vld [vmem:[#allocation2 + $0x94] ss:$12 sps:$4 sm:$0xff]   ;;  %v720_v6 = vld [vmem:[#allocation2 + $0x7c] ss:$12 sps:$4 sm:$0xff]   ;;  %v722_v7 = vld [vmem:[#allocation2 + $0x78] ss:$12 sps:$4 sm:$0xff]  }
  0x1e   :  { %233 = vmatpush1.bf16.msra.mxu0 %v716_v3  ;;  %v723_v8 = vld [vmem:[#allocation2 + $0x64] ss:$12 sps:$4 sm:$0xff]   ;;  %v725_v9 = vld [vmem:[#allocation2 + $0x60] ss:$12 sps:$4 sm:$0xff]   ;;  %v728_v13 = vld [vmem:[#allocation2 + $0x48] ss:$12 sps:$4 sm:$0xff]  }
  0x1f   :  { %234 = vmatprep.subr.bf16.mxu0 %v717_v4  ;;  %v738_v10 = vld [vmem:[#allocation2 + $0xb0] ss:$12 sps:$4 sm:$0xff]   ;;  %v726_v11 = vld [vmem:[#allocation2 + $0x4c] ss:$12 sps:$4 sm:$0xff]   ;;  %v729_v14 = vld [vmem:[#allocation2 + $0x34] ss:$12 sps:$4 sm:$0xff]  }
  0x20   :  { %668 = vmatpush3.bf16.msra.mxu1 %v738_v10  ;;  %v742_v12 = vld [vmem:[#allocation2 + $0x98] ss:$12 sps:$4 sm:$0xff]   ;;  %v746_v15 = vld [vmem:[#allocation2 + $0x80] ss:$12 sps:$4 sm:$0xff]   ;;  %v731_v16 = vld [vmem:[#allocation2 + $0x30] ss:$12 sps:$4 sm:$0xff]  }
  0x21   :  { %669 = vmatprep.subr.bf16.mxu1 %v836_v0  ;;  %v732_v17 = vld [vmem:[#allocation2 + $0x1c] ss:$12 sps:$4 sm:$0xff]   ;;  %v734_v19 = vld [vmem:[#allocation2 + $0x18] ss:$12 sps:$4 sm:$0xff]   ;;  %v737_v22 = vld [vmem:[#allocation2] ss:$12 sps:$4 sm:$0xff]  }
  0x22   :  { %235 = vmatpush1.bf16.msra.mxu0 %v719_v5  ;;  %v750_v18 = vld [vmem:[#allocation2 + $0x68] ss:$12 sps:$4 sm:$0xff]   ;;  %v735_v20 = vld [vmem:[#allocation2 + $0x4] ss:$12 sps:$4 sm:$0xff]   ;;  %v741_v24 = vld [vmem:[#allocation4 + $0xac] ss:$12 sps:$4 sm:$0xff]  }
  0x23   :  { %236 = vmatprep.subr.bf16.mxu0 %v720_v6  ;;  %v754_v21 = vld [vmem:[#allocation2 + $0x50] ss:$12 sps:$4 sm:$0xff]   ;;  %v758_v25 = vld [vmem:[#allocation2 + $0x38] ss:$12 sps:$4 sm:$0xff]   ;;  %v739_v27 = vld [vmem:[#allocation4 + $0xa8] ss:$12 sps:$4 sm:$0xff]  }
  0x24   :  { %670 = vmatpush3.bf16.msra.mxu1 %v742_v12  ;;  %v745_v28 = vld [vmem:[#allocation4 + $0x94] ss:$12 sps:$4 sm:$0xff]   ;;  %v743_v30 = vld [vmem:[#allocation4 + $0x90] ss:$12 sps:$4 sm:$0xff]   ;;  %v747_v33 = vld [vmem:[#allocation4 + $0x78] ss:$12 sps:$4 sm:$0xff]  }
  0x25   :  { %671 = vmatprep.subr.bf16.mxu1 %v836_v0  ;;  %v762_v29 = vld [vmem:[#allocation2 + $0x20] ss:$12 sps:$4 sm:$0xff]   ;;  %v749_v31 = vld [vmem:[#allocation4 + $0x7c] ss:$12 sps:$4 sm:$0xff]   ;;  %v753_v34 = vld [vmem:[#allocation4 + $0x64] ss:$12 sps:$4 sm:$0xff]  }
  0x26   :  { %237 = vmatpush1.bf16.msra.mxu0 %v722_v7  ;;  %v766_v32 = vld [vmem:[#allocation2 + $0x8] ss:$12 sps:$4 sm:$0xff]   ;;  %v770_v35 = vld [vmem:[#allocation4 + $0xb0] ss:$12 sps:$4 sm:$0xff]   ;;  %v751_v36 = vld [vmem:[#allocation4 + $0x60] ss:$12 sps:$4 sm:$0xff]  }
  0x27   :  { %238 = vmatprep.subr.bf16.mxu0 %v723_v8  ;;  %v757_v37 = vld [vmem:[#allocation4 + $0x4c] ss:$12 sps:$4 sm:$0xff]   ;;  %v755_v39 = vld [vmem:[#allocation4 + $0x48] ss:$12 sps:$4 sm:$0xff]   ;;  %v759_v42 = vld [vmem:[#allocation4 + $0x30] ss:$12 sps:$4 sm:$0xff]  }
  0x28   :  { %672 = vmatpush3.bf16.msra.mxu1 %v746_v15  ;;  %v771_v38 = vld [vmem:[#allocation4 + $0x98] ss:$12 sps:$4 sm:$0xff]   ;;  %v761_v40 = vld [vmem:[#allocation4 + $0x34] ss:$12 sps:$4 sm:$0xff]   ;;  %v765_v43 = vld [vmem:[#allocation4 + $0x1c] ss:$12 sps:$4 sm:$0xff]  }
  0x29   :  { %673 = vmatprep.subr.bf16.mxu1 %v836_v0  ;;  %v772_v41 = vld [vmem:[#allocation4 + $0x80] ss:$12 sps:$4 sm:$0xff]   ;;  %v773_v44 = vld [vmem:[#allocation4 + $0x68] ss:$12 sps:$4 sm:$0xff]   ;;  %v763_v45 = vld [vmem:[#allocation4 + $0x18] ss:$12 sps:$4 sm:$0xff]  }
  0x2a   :  { %239 = vmatpush1.bf16.msra.mxu0 %v725_v9  ;;  %v769_v46 = vld [vmem:[#allocation4 + $0x4] ss:$12 sps:$4 sm:$0xff]   ;;  %v767_v48 = vld [vmem:[#allocation4] ss:$12 sps:$4 sm:$0xff]   ;;  %v777_v53 = vld [vmem:[#allocation4 + $0x8] ss:$12 sps:$4 sm:$0xff]  }
  0x2b   :  { %240 = vmatprep.subr.bf16.mxu0 %v726_v11  ;;  %v774_v47 = vld [vmem:[#allocation4 + $0x50] ss:$12 sps:$4 sm:$0xff]   ;;  %v905_v49 = vld [vmem:[%s923_s1] sm:$0xff]  ;;  %v90_v63 = vshrl.u32 %v89_v62, 7 }
  0x2c   :  { %674 = vmatpush3.bf16.msra.mxu1 %v750_v18  ;;  %v775_v50 = vld [vmem:[#allocation4 + $0x38] ss:$12 sps:$4 sm:$0xff]   ;;  %v313_v51 = vpack.c.bf16 %v905_v49, %v905_v49  ;;  %v776_v52 = vld [vmem:[#allocation4 + $0x20] ss:$12 sps:$4 sm:$0xff]  }
  0x2d   :  { %675 = vmatprep.subr.bf16.mxu1 %v836_v0  ;;  %v87_v2 = vld [vmem:[%s925_s3] sm:$0x7]  ;;  %v95_v10 = vsub.s32 1, %v90_v63 }
  0x2e   :  { %241 = vmatpush1.bf16.msra.mxu0 %v728_v13 }
  0x2f   :  { %242 = vmatprep.subr.bf16.mxu0 %v729_v14  ;;  %v96_v15 = vrot.slane %v87_v2, %v95_v10 }
  0x30   :  { %676 = vmatpush3.bf16.msra.mxu1 %v754_v21 }
  0x31   :  { %677 = vmatprep.subr.bf16.mxu1 %v836_v0 }
  0x32   :  { %243 = vmatpush1.bf16.msra.mxu0 %v731_v16 }
  0x33   :  { %244 = vmatprep.subr.bf16.mxu0 %v732_v17 }
  0x34   :  { %678 = vmatpush3.bf16.msra.mxu1 %v758_v25 }
  0x35   :  { %679 = vmatprep.subr.bf16.mxu1 %v836_v0 }
  0x36   :  { %245 = vmatpush1.bf16.msra.mxu0 %v734_v19 }
  0x37   :  { %246 = vmatprep.subr.bf16.mxu0 %v735_v20 }
  0x38   :  { %680 = vmatpush3.bf16.msra.mxu1 %v762_v29 }
  0x39   :  { %681 = vmatprep.subr.bf16.mxu1 %v836_v0 }
  0x3a   :  { %247 = vmatpush1.bf16.msra.mxu0 %v737_v22 }
  0x3b   :  { %491 = vmatprep.subr.bf16.mxu0 %v741_v24 }
  0x3c   :  { %682 = vmatpush3.bf16.msra.mxu1 %v766_v32 }
  0x3d   :  { %265 = vmatmul.mubr.bf16.vlgmr.msra.gmra.mxu0 %v54_v26  ;;  %687 = vmatprep.subr.bf16.mxu1 %v836_v0 }
  0x3e   :  { %492 = vmatpush1.bf16.msra.mxu0 %v739_v27  ;;  %523 = vmatprep.mubr.bf16.mxu0 %v837_v1  ;;  %v91_v1 = vsub.s32 0, %v90_v63 }
  0x3f   :  { %493 = vmatprep.subr.bf16.mxu0 %v745_v28  ;;  %684 = vmatmul.mubr.bf16.vlgmr.msra.gmra.mxu1 %v54_v26  ;;  %v99_v26 = vsub.s32 2, %v90_v63 }
  0x40   :  { %688 = vmatpush3.bf16.msra.mxu1 %v770_v35  ;;  %703 = vmatprep.mubr.msk.bf16.mxu1 %vm838_vm0, %v836_v0  ;;  %v92_v3 = vrot.slane %v87_v2, %v91_v1 }
  0x41   :  { %689 = vmatprep.subr.bf16.mxu1 %v836_v0  ;;  %v100_v28 = vrot.slane %v87_v2, %v99_v26 }
  0x42   :  { %494 = vmatpush1.bf16.msra.mxu0 %v743_v30 }
  0x43   :  { %495 = vmatprep.subr.bf16.mxu0 %v749_v31 }
  0x44   :  { %690 = vmatpush3.bf16.msra.mxu1 %v771_v38 }
  0x45   :  { %691 = vmatprep.subr.bf16.mxu1 %v836_v0 }
  0x46   :  { %496 = vmatpush1.bf16.msra.mxu0 %v747_v33 }
  0x47   :  { %497 = vmatprep.subr.bf16.mxu0 %v753_v34 }
  0x48   :  { %692 = vmatpush3.bf16.msra.mxu1 %v772_v41 }
  0x49   :  { %693 = vmatprep.subr.bf16.mxu1 %v836_v0 }
  0x4a   :  { %498 = vmatpush1.bf16.msra.mxu0 %v751_v36 }
  0x4b   :  { %499 = vmatprep.subr.bf16.mxu0 %v757_v37 }
  0x4c   :  { %694 = vmatpush3.bf16.msra.mxu1 %v773_v44 }
  0x4d   :  { %695 = vmatprep.subr.bf16.mxu1 %v836_v0 }
  0x4e   :  { %500 = vmatpush1.bf16.msra.mxu0 %v755_v39 }
  0x4f   :  { %501 = vmatprep.subr.bf16.mxu0 %v761_v40 }
  0x50   :  { %696 = vmatpush3.bf16.msra.mxu1 %v774_v47 }
  0x51   :  { %697 = vmatprep.subr.bf16.mxu1 %v836_v0 }
  0x52   :  { %502 = vmatpush1.bf16.msra.mxu0 %v759_v42 }
  0x53   :  { %503 = vmatprep.subr.bf16.mxu0 %v765_v43 }
  0x54   :  { %698 = vmatpush3.bf16.msra.mxu1 %v775_v50 }
  0x55   :  { %699 = vmatprep.subr.bf16.mxu1 %v836_v0 }
  0x56   :  { %504 = vmatpush1.bf16.msra.mxu0 %v763_v45 }
  0x57   :  { %505 = vmatprep.subr.bf16.mxu0 %v769_v46 }
  0x58   :  { %700 = vmatpush3.bf16.msra.mxu1 %v776_v52 }
  0x59   :  { %701 = vmatprep.subr.bf16.mxu1 %v836_v0  ;;  %v346_v0 = vld [vmem:[%s927_s5] sm:$0x7] }
  0x5a   :  { %506 = vmatpush1.bf16.msra.mxu0 %v767_v48  ;;  %v351_v4 = vrot.slane %v346_v0, %v91_v1  ;;  %v355_v13 = vrot.slane %v346_v0, %v95_v10  ;;  %v359_v27 = vrot.slane %v346_v0, %v99_v26 }
  0x5c   :  { %702 = vmatpush3.bf16.msra.mxu1 %v777_v53 }
  0x5d   :  { %524 = vmatmul.mubr.bf16.vlgmr.msra.gmra.mxu0 %v313_v51 }
  0x5f   :  { %704 = vmatmul.mubr.bf16.vlgmr.msra.gmra.mxu1 %v313_v51 }
  0xfd   :  { %v266_v54 = vpop.f32.mrf.mxu0 }
  0xfe   :  { %v267_v6 = vadd.f32 %v266_v54, %v92_v3 }
  0xff   :  { %v268_v55 = vpop.f32.mrf.mxu0  ;;  %v307_v58 = vpop.f32.mrf.mxu1 }
 0x100   :  { %v269_v18 = vadd.f32 %v268_v55, %v96_v15  ;;  %v308_v32 = vadd.f32 %v307_v58, %v100_v28 }
 0x101   :  { %v270_v56 = vpop.f32.mrf.mxu0  ;;  %v685_v59 = vpop.f32.mrf.mxu1 }
 0x103   :  { %v271_v57 = vpop.f32.mrf.mxu0  ;;  %v310_v60 = vpop.f32.mrf.mxu1 }
 0x105   :  { %v686_v61 = vpop.f32.mrf.mxu1 }
 0x11d   :  { %v525_v5 = vpop.f32.mrf.mxu0 }
 0x11e   :  { %v526_v7 = vadd.f32 %v525_v5, %v351_v4 }
 0x11f   :  { %v527_v8 = vpop.f32.mrf.mxu0  ;;  %v566_v17 = vpop.f32.mrf.mxu1 }
 0x120   :  { %v572_v9 = vadd.f32 %v526_v7, %v267_v6  ;;  %v528_v16 = vadd.f32 %v527_v8, %v355_v13  ;;  %v567_v29 = vadd.f32 %v566_v17, %v359_v27 }
 0x121   :  { %v529_v11 = vpop.f32.mrf.mxu0  ;;  %v705_v19 = vpop.f32.mrf.mxu1 }
 0x122   :  { %v647_v12 = vmul.f32 -1.442695, %v572_v9  ;;  %v579_v20 = vadd.f32 %v528_v16, %v269_v18 }
 0x123   :  { %v530_v14 = vpop.f32.mrf.mxu0  ;;  %v569_v21 = vpop.f32.mrf.mxu1 }
 0x124   :  { %778 = vpow2.f32 %v647_v12  ;;  %v648_v23 = vmul.f32 -1.442695, %v579_v20 }
 0x125   :  { %v706_v22 = vpop.f32.mrf.mxu1 }
 0x126   :  { %780 = vpow2.f32 %v648_v23 }
 0x131   :  { %v779_v24 = vpop.eup %778 }
 0x132   :  { %v576_v25 = vadd.f32 1.0, %v779_v24 }
 0x133   :  { %v781_v30 = vpop.eup %780 }
 0x134   :  { %782 = vrcp.f32 %v576_v25  ;;  %v583_v34 = vadd.f32 1.0, %v781_v30 }
 0x141   :  { %v783_v31 = vpop.eup %782 }
 0x142   :  { %v586_v33 = vmul.f32 %v783_v31, %v567_v29 }
 0x144   :  { %v587_v35 = vadd.f32 %v586_v33, %v308_v32 }
 0x146   :  { %784 = vtanh.f32 %v587_v35 }
 0x147   :  { %786 = vrcp.f32 %v583_v34 }
 0x153   :  { %v785_v36 = vpop.eup %784 }
 0x154   :  { %v589_v37 = vsub.f32 %v905_v49, %v785_v36  ;;  %v787_v38 = vpop.eup %786 }
 0x156   :  { %v590_v39 = vmul.f32 %v787_v38, %v589_v37 }
 0x158   :  { %v591_v40 = vadd.f32 %v785_v36, %v590_v39 }
 0x15a   :  { %592 = vst [vmem:[%s928_s6] sm:$0xff] %v591_v40 }
 0x15b   :  { %597 = vsyncpa [#allocation3], 1 }
 0x15c   :  { %598 = vsyncpa [#allocation5], 1 }

</bundles_post_ra>
